<compile_context>
chip_gen: v6e
topology: v6e:2x2x1
jax: 0.10.0
libtpu: 0.0.40
codegen_flags: <defaults>
</compile_context>

<pallas_src>
import jax
import jax.numpy as jnp
from jax.experimental import pallas as pl
from jax.experimental.pallas import tpu as pltpu

# ----------------------- configuration (CFG) -----------------------
NUM_FILTERS = 32          # CFG.num_filters
H, W = 8, 8               # board height / width given to ValueHead(h, w)
HW = H * W
BN_EPS = 1e-5
MAX_BATCH_TILE = 512      # rows per grid step (multiple of 8; 4 MiB f32 x-tile)


# ----------------------------- kernel ------------------------------
def value_head_kernel(scal_ref, x_ref, wcb_ref, w1t_ref, b1_ref, w2_ref, out_ref):
    # scal_ref: SMEM (2,)  = [bn_shift, lin2_bias]
    # x_ref:    VMEM (BT, C*HW)   native flattened NCHW activations (f32 or bf16)
    # wcb_ref:  VMEM (C*HW, HW)   folded conv1x1+BN as kron(wc', I_HW), x dtype
    # w1t_ref:  VMEM (HW, C)      linear1.weight^T, f32 (resident)
    # b1_ref:   VMEM (1, C)       linear1.bias row, f32
    # w2_ref:   VMEM (1, C)       linear2.weight row, f32
    # out_ref:  VMEM (BT, 1)      f32
    # --- conv1x1 (+ folded BN) as one MXU matmul, then ReLU ---
    y = jnp.dot(x_ref[...], wcb_ref[...], preferred_element_type=jnp.float32)
    y = jnp.maximum(y + scal_ref[0], 0.0)                       # (BT, HW) f32

    # --- flatten is the layout; linear1 + ReLU (small MXU matmul, f32) ---
    z = jnp.dot(y, w1t_ref[...], preferred_element_type=jnp.float32) + b1_ref[...]
    z = jnp.maximum(z, 0.0)                                     # (BT, C)

    # --- linear2 + tanh as a lane reduce (skip the degenerate N=1 matmul) ---
    v = jnp.sum(z * w2_ref[...], axis=1, keepdims=True) + scal_ref[1]
    out_ref[...] = jnp.tanh(v).astype(out_ref.dtype)            # (BT, 1)


# --------------------------- tile picker ----------------------------
def _round8(n):
    return ((n + 7) // 8) * 8


def _pick_batch_tile(b, max_tile):
    """Multiple-of-8 tile; even block count when the batch spans several tiles."""
    if b <= max_tile:
        return _round8(max(b, 1))
    nblk = pl.cdiv(b, max_tile)
    nblk += nblk % 2                       # even -> balanced across v7x TensorCores
    return min(max_tile, _round8(pl.cdiv(b, nblk)))


# ----------------------------- wrapper -----------------------------
def value_head_forward(x_nchw, params, *, max_batch_tile=MAX_BATCH_TILE):
    """x_nchw: (B, C, H, W) float32/bfloat16 -> (B, 1) float32."""
    b, c, h, w = x_nchw.shape
    hw = h * w
    feat = c * hw
    xdt = x_nchw.dtype

    # Fold eval-mode BN into the conv weight / a single shift (trace time).
    inv_std = jax.lax.rsqrt(params["bn_var"].astype(jnp.float32) + BN_EPS)   # (1,)
    scale = params["bn_gamma"].astype(jnp.float32) * inv_std                 # (1,)
    wc_f = params["conv_w"].reshape(c).astype(jnp.float32) * scale           # (C,)
    shift = (params["bn_beta"].astype(jnp.float32)
             - params["bn_mean"].astype(jnp.float32) * scale)                # (1,)
    scalars = jnp.concatenate(
        [shift.reshape(1), params["lin2_b"].reshape(1).astype(jnp.float32)]
    ).astype(jnp.float32)                                                    # (2,)

    # Structured conv+BN matrix: Wcb[c*HW+p, q] = wc'[c] * I[p, q]  -> (C*HW, HW).
    wcb = jnp.kron(wc_f.reshape(c, 1), jnp.eye(hw, dtype=jnp.float32)).astype(xdt)

    w1t = params["lin1_w"].astype(jnp.float32).T                 # (HW, C)
    b1 = params["lin1_b"].reshape(1, c).astype(jnp.float32)      # (1, C)
    w2 = params["lin2_w"].reshape(1, c).astype(jnp.float32)      # (1, C)

    # Free, contiguous reshape: no transpose, no pad, no extra HBM traffic.
    x2d = x_nchw.reshape(b, feat)                                # (B, C*HW)

    bt = _pick_batch_tile(b, max_batch_tile)
    grid = (pl.cdiv(b, bt),)

    out = pl.pallas_call(
        value_head_kernel,
        out_shape=jax.ShapeDtypeStruct((b, 1), jnp.float32),
        grid=grid,
        in_specs=[
            pl.BlockSpec(memory_space=pltpu.MemorySpace.SMEM),        # scalars
            pl.BlockSpec((bt, feat), lambda i: (i, 0)),               # x tile (contiguous)
            pl.BlockSpec((feat, hw), lambda i: (0, 0)),               # Wcb (resident)
            pl.BlockSpec((hw, c), lambda i: (0, 0)),                  # w1^T (resident)
            pl.BlockSpec((1, c), lambda i: (0, 0)),                   # b1 row
            pl.BlockSpec((1, c), lambda i: (0, 0)),                   # w2 row
        ],
        out_specs=pl.BlockSpec((bt, 1), lambda i: (i, 0)),
        compiler_params=pltpu.CompilerParams(
            dimension_semantics=("parallel",),
            vmem_limit_bytes=32 * 1024 * 1024),
    )(scalars, x2d, wcb, w1t, b1, w2)

    return out                                                    # (B, 1)


# --------------------------- pure-JAX ref ---------------------------
def value_head_ref(x_nchw, p):
    b, c, h, w = x_nchw.shape
    conv = jnp.einsum('bchw,c->bhw', x_nchw.astype(jnp.float32),
                      p["conv_w"].reshape(c))                            # (B,H,W)
    y = (conv - p["bn_mean"][0]) / jnp.sqrt(p["bn_var"][0] + BN_EPS)
    y = y * p["bn_gamma"][0] + p["bn_beta"][0]
    y = jnp.maximum(y, 0.0).reshape(b, -1)                               # (B,HW)
    z = jnp.maximum(y @ p["lin1_w"].T + p["lin1_b"], 0.0)                # (B,C)
    return jnp.tanh(z @ p["lin2_w"].T + p["lin2_b"])                     # (B,1)


# --------------------------- param init -----------------------------
def init_params(key, c, hw):
    ks = jax.random.split(key, 9)
    return {
        # conv1: Conv2d(c, 1, kernel_size=1, bias=False) -> weight (1, c, 1, 1)
        "conv_w":   jax.random.normal(ks[0], (1, c, 1, 1), jnp.float32) * 0.1,
        # bn1: BatchNorm2d(1), eval-mode running stats + affine
        "bn_gamma": 1.0 + 0.1 * jax.random.normal(ks[1], (1,), jnp.float32),
        "bn_beta":  0.1 * jax.random.normal(ks[2], (1,), jnp.float32),
        "bn_mean":  0.1 * jax.random.normal(ks[3], (1,), jnp.float32),
        "bn_var":   0.5 + jax.random.uniform(ks[4], (1,), jnp.float32),
        # linear1: Linear(hw, c) -> weight (c, hw), bias (c,)
        "lin1_w":   jax.random.normal(ks[5], (c, hw), jnp.float32) * 0.05,
        "lin1_b":   jax.random.normal(ks[6], (c,), jnp.float32) * 0.05,
        # linear2: Linear(c, 1) -> weight (1, c), bias (1,)
        "lin2_w":   jax.random.normal(ks[7], (1, c), jnp.float32) * 0.05,
        "lin2_b":   jax.random.normal(ks[8], (1,), jnp.float32) * 0.05,
    }


if __name__ == "__main__":
    key = jax.random.PRNGKey(0)
    kx, kp, kx2, kx3 = jax.random.split(key, 4)
    params = init_params(kp, NUM_FILTERS, HW)

    # 1) small demo batch, f32 streaming, tight check
    x = jax.random.normal(kx, (2, NUM_FILTERS, H, W), jnp.float32)
    out = jax.block_until_ready(value_head_forward(x, params))
    ref = value_head_ref(x, params)
    assert out.shape == (2, 1), out.shape
    assert jnp.allclose(out, ref, atol=2e-5, rtol=2e-5), (out, ref)

    # 2) ragged batch: single partial block handled by Pallas edge masking (no pad)
    B2 = 300
    x2 = jax.random.normal(kx2, (B2, NUM_FILTERS, H, W), jnp.float32)
    out2 = jax.block_until_ready(value_head_forward(x2, params))
    ref2 = value_head_ref(x2, params)
    assert out2.shape == (B2, 1), out2.shape
    assert jnp.allclose(out2, ref2, atol=2e-5, rtol=2e-5)

    # 3) bf16-producer path: multi-block "parallel" grid, half the HBM x traffic
    B3 = 1200
    x3 = jax.random.normal(
        kx3, (B3, NUM_FILTERS, H, W), jnp.float32).astype(jnp.bfloat16)
    out3 = jax.block_until_ready(value_head_forward(x3, params))
    ref3 = value_head_ref(x3, params)
    assert out3.shape == (B3, 1), out3.shape
    assert jnp.allclose(out3, ref3, atol=3e-2, rtol=3e-2)

    print("KERNEL_OK")
</pallas_src>

<mosaic_0001>
module attributes {stable_mosaic.version = 11 : i64} {
  func.func @value_head_kernel(%arg0: i32, %arg1: memref<2xf32, #tpu.memory_space<smem>>, %arg2: memref<8x2048xf32, #tpu.memory_space<vmem>>, %arg3: memref<2048x64xf32, #tpu.memory_space<vmem>>, %arg4: memref<64x32xf32, #tpu.memory_space<vmem>>, %arg5: memref<1x32xf32, #tpu.memory_space<vmem>>, %arg6: memref<1x32xf32, #tpu.memory_space<vmem>>, %arg7: memref<8x1xf32, #tpu.memory_space<vmem>>) attributes {dimension_semantics = [#tpu.dimension_semantics<parallel>], iteration_bounds = array<i64: 1>, scalar_prefetch = 0 : i64, scratch_operands = 0 : i64, tpu.core_type = #tpu.core_type<tc>, window_params = [{transform_indices = @transform_0, window_bounds = array<i64: 2>}, {transform_indices = @transform_1, window_bounds = array<i64: 8, 2048>}, {pipeline_mode = #tpu.pipeline_mode<synchronous>, transform_indices = @transform_2, window_bounds = array<i64: 2048, 64>}, {pipeline_mode = #tpu.pipeline_mode<synchronous>, transform_indices = @transform_3, window_bounds = array<i64: 64, 32>}, {pipeline_mode = #tpu.pipeline_mode<synchronous>, transform_indices = @transform_4, window_bounds = array<i64: 1, 32>}, {pipeline_mode = #tpu.pipeline_mode<synchronous>, transform_indices = @transform_5, window_bounds = array<i64: 1, 32>}, {transform_indices = @transform_6, window_bounds = array<i64: 8, 1>}]} {
    %c0 = arith.constant 0 : index
    %c0_0 = arith.constant 0 : index
    %0 = vector.load %arg2[%c0, %c0_0] : memref<8x2048xf32, #tpu.memory_space<vmem>>, vector<8x2048xf32>
    %c0_1 = arith.constant 0 : index
    %c0_2 = arith.constant 0 : index
    %1 = vector.load %arg3[%c0_1, %c0_2] : memref<2048x64xf32, #tpu.memory_space<vmem>>, vector<2048x64xf32>
    %cst = arith.constant dense<0.000000e+00> : vector<8x64xf32>
    %2 = tpu.matmul %0, %1, %cst {dimension_numbers = #tpu.dot_dimension_numbers<[1], [0], [0], [1], [0, 0, 1, 1], [], []>} : vector<8x2048xf32>, vector<2048x64xf32>, vector<8x64xf32> -> vector<8x64xf32>
    %c0_3 = arith.constant 0 : index
    %3 = memref.load %arg1[%c0_3] : memref<2xf32, #tpu.memory_space<smem>>
    %4 = vector.broadcast %3 : f32 to vector<8x64xf32>
    %5 = arith.addf %2, %4 : vector<8x64xf32>
    %cst_4 = arith.constant 0.000000e+00 : f32
    %6 = vector.broadcast %cst_4 : f32 to vector<8x64xf32>
    %7 = arith.maximumf %5, %6 : vector<8x64xf32>
    %c0_5 = arith.constant 0 : index
    %c0_6 = arith.constant 0 : index
    %8 = vector.load %arg4[%c0_5, %c0_6] : memref<64x32xf32, #tpu.memory_space<vmem>>, vector<64x32xf32>
    %cst_7 = arith.constant dense<0.000000e+00> : vector<8x32xf32>
    %9 = tpu.matmul %7, %8, %cst_7 {dimension_numbers = #tpu.dot_dimension_numbers<[1], [0], [0], [1], [0, 0, 1, 1], [], []>} : vector<8x64xf32>, vector<64x32xf32>, vector<8x32xf32> -> vector<8x32xf32>
    %c0_8 = arith.constant 0 : index
    %c0_9 = arith.constant 0 : index
    %10 = vector.load %arg5[%c0_8, %c0_9] : memref<1x32xf32, #tpu.memory_space<vmem>>, vector<1x32xf32>
    %11 = vector.broadcast %10 : vector<1x32xf32> to vector<8x32xf32>
    %12 = arith.addf %9, %11 : vector<8x32xf32>
    %cst_10 = arith.constant 0.000000e+00 : f32
    %13 = vector.broadcast %cst_10 : f32 to vector<8x32xf32>
    %14 = arith.maximumf %12, %13 : vector<8x32xf32>
    %c0_11 = arith.constant 0 : index
    %c0_12 = arith.constant 0 : index
    %15 = vector.load %arg6[%c0_11, %c0_12] : memref<1x32xf32, #tpu.memory_space<vmem>>, vector<1x32xf32>
    %16 = vector.broadcast %15 : vector<1x32xf32> to vector<8x32xf32>
    %17 = arith.mulf %14, %16 : vector<8x32xf32>
    %cst_13 = arith.constant dense<0.000000e+00> : vector<8xf32>
    %18 = vector.multi_reduction <add>, %17, %cst_13 [1] : vector<8x32xf32> to vector<8xf32>
    %19 = vector.shape_cast %18 : vector<8xf32> to vector<8x1xf32>
    %c1 = arith.constant 1 : index
    %20 = memref.load %arg1[%c1] : memref<2xf32, #tpu.memory_space<smem>>
    %21 = vector.broadcast %20 : f32 to vector<8x1xf32>
    %22 = arith.addf %19, %21 : vector<8x1xf32>
    %23 = math.tanh %22 : vector<8x1xf32>
    %c0_14 = arith.constant 0 : index
    %c0_15 = arith.constant 0 : index
    %24 = vector.load %arg7[%c0_14, %c0_15] : memref<8x1xf32, #tpu.memory_space<vmem>>, vector<8x1xf32>
    tpu.vector_store %arg7[%c0_14, %c0_15], %23 {strides = array<i32>} : memref<8x1xf32, #tpu.memory_space<vmem>>, vector<8x1xf32>,
    return
  }
  func.func @transform_0(%arg0: i32) -> i32 {
    %c0_i32 = arith.constant 0 : i32
    %c0_i32_0 = arith.constant 0 : i32
    return %c0_i32 : i32
  }
  func.func @transform_1(%arg0: i32) -> (i32, i32) {
    %c0_i32 = arith.constant 0 : i32
    %c0_i32_0 = arith.constant 0 : i32
    return %arg0, %c0_i32 : i32, i32
  }
  func.func @transform_2(%arg0: i32) -> (i32, i32) {
    %c0_i32 = arith.constant 0 : i32
    %c0_i32_0 = arith.constant 0 : i32
    %c0_i32_1 = arith.constant 0 : i32
    return %c0_i32, %c0_i32_0 : i32, i32
  }
  func.func @transform_3(%arg0: i32) -> (i32, i32) {
    %c0_i32 = arith.constant 0 : i32
    %c0_i32_0 = arith.constant 0 : i32
    %c0_i32_1 = arith.constant 0 : i32
    return %c0_i32, %c0_i32_0 : i32, i32
  }
  func.func @transform_4(%arg0: i32) -> (i32, i32) {
    %c0_i32 = arith.constant 0 : i32
    %c0_i32_0 = arith.constant 0 : i32
    %c0_i32_1 = arith.constant 0 : i32
    return %c0_i32, %c0_i32_0 : i32, i32
  }
  func.func @transform_5(%arg0: i32) -> (i32, i32) {
    %c0_i32 = arith.constant 0 : i32
    %c0_i32_0 = arith.constant 0 : i32
    %c0_i32_1 = arith.constant 0 : i32
    return %c0_i32, %c0_i32_0 : i32, i32
  }
  func.func @transform_6(%arg0: i32) -> (i32, i32) {
    %c0_i32 = arith.constant 0 : i32
    %c0_i32_0 = arith.constant 0 : i32
    return %arg0, %c0_i32 : i32, i32
  }
}

</mosaic_0001>

<bundles_post_ra>
// kernel: tpu_custom_call.1
= control target key start
LH: loop header
LB: loop body
LE: loop exit
PB: predicated region body
PF: predicated region fallthrough
CT: control target
= control target key end

     0   :  { %11 = vsyncpa [#allocation3], 0  ;;  %s2438_s0 = inlined_call_operand.vmem [shape: f32[2], index: 0, kind: input, shape index: {}]   ;;  %s2439_s1 = inlined_call_operand.vmem [shape: f32[2,2048], index: 1, kind: input, shape index: {}]   ;;  %s2440_s2 = inlined_call_operand.vmem [shape: f32[2048,64], index: 2, kind: input, shape index: {}]   ;;  %s2441_s3 = inlined_call_operand.vmem [shape: f32[64,32], index: 3, kind: input, shape index: {}]   ;;  %s2442_s4 = inlined_call_operand.vmem [shape: f32[1,32], index: 4, kind: input, shape index: {}]   ;;  %s2443_s5 = inlined_call_operand.vmem [shape: f32[1,32], index: 5, kind: input, shape index: {}]   ;;  %s2444_s6 = inlined_call_operand.vmem [shape: f32[2,1], index: 6, kind: output, shape index: {}]  }
   0x1   :  { %s18_s23 = sshll.u32 %s2438_s0, 4  ;;  %s19_s23 = int_to_ptr.vmem [resolvable:$true] %s18_s23 }
   0x2   :  { %s1515_s24 = scalar_lea.vmem %s19_s23, 16  ;;  %p1520_p1 = scmp.lt.s32.totalorder %s19_s23, %s19_s23 }
   0x3   :  { %p1516_p0 = scmp.ne.s32.totalorder %s19_s23, %s1515_s24  ;;  %p1521_p2 = scmp.lt.s32.totalorder %s1515_s24, %s1515_s24 }
   0x5   :  { %p1522_p3 = por %p1521_p2, %p1520_p1 }
   0x7   :  { %p1523_p4 = pnand %p1522_p3, %p1516_p0 }
   0x9   :  { %1526 = shalt.err (!%p1523_p4)
}
   0xa   :  { %s1529_s25 = smov [#allocation2]  }
   0xb   :  { %21 = dma.vmem_to_smem %s19_s23, 16, %s1529_s25, [#allocation3]  }
   0xc   :  { %1527 = dma.done.wait [#allocation3], 16  }
   0xd   :  { %1528 = vsyncadd [#allocation3], 4294967280 }
   0xe   :  { %35 = sfence }
   0xf   :  { %v83_v0 = vld [vmem:[%s2440_s2 + $0xf8] sm:$0xff]  ;;  %v82_v4 = vld [vmem:[%s2440_s2 + $0xf0] sm:$0xff]  ;;  %v81_v8 = vld [vmem:[%s2440_s2 + $0xe8] sm:$0xff]  ;;  %v1530_v30 = vmov 1983009808   ;;  %v333_v32 = vlaneseq  ;;  %vm1532_vm0 = vmmov 0  }
  0x10   :  { %v115_v1 = vld [vmem:[%s2440_s2 + $0x1f8] sm:$0xff]  ;;  %1201 = vmatprep.subr.mxu0 %v83_v0  ;;  %v114_v5 = vld [vmem:[%s2440_s2 + $0x1f0] sm:$0xff]  ;;  %v113_v9 = vld [vmem:[%s2440_s2 + $0x1e8] sm:$0xff]  ;;  %v331_v31 = vunpack.c.l.s4 %v1530_v30  ;;  %s308_s7 = sld [smem:[#allocation2]]  ;;  %vm1062_vm1 = vcmask 523264   ;;  %vm1145_vm2 = vcmask 261120  }
  0x11   :  { %v67_v2 = vld [vmem:[%s2440_s2 + $0x78] sm:$0xff]  ;;  %1236 = vmatprep.subr.mxu1 %v115_v1  ;;  %v66_v6 = vld [vmem:[%s2440_s2 + $0x70] sm:$0xff]  ;;  %v65_v10 = vld [vmem:[%s2440_s2 + $0x68] sm:$0xff]  ;;  %v334_v42 = vshrl.u32 %v333_v32, 7  ;;  %s1200_s11 = sld [smem:[#allocation2 + $0x1]]  ;;  %vm1153_vm3 = vcmask 7168  }
  0x12   :  { %v99_v3 = vld [vmem:[%s2440_s2 + $0x178] sm:$0xff]  ;;  %1202 = vmatpush3.msra.mxu0 %v67_v2  ;;  %v98_v7 = vld [vmem:[%s2440_s2 + $0x170] sm:$0xff]  ;;  %v97_v11 = vld [vmem:[%s2440_s2 + $0x168] sm:$0xff]  ;;  %v332_v41 = vunpack.c.0.s8 %v331_v31 }
  0x13   :  { %1237 = vmatpush3.msra.mxu1 %v99_v3  ;;  %1203 = vmatprep.subr.mxu0 %v82_v4  ;;  %v80_v12 = vld [vmem:[%s2440_s2 + $0xe0] sm:$0xff]  ;;  %v79_v16 = vld [vmem:[%s2440_s2 + $0xd8] sm:$0xff]  ;;  %v78_v20 = vld [vmem:[%s2440_s2 + $0xd0] sm:$0xff] }
  0x14   :  { %1238 = vmatprep.subr.mxu1 %v114_v5  ;;  %1204 = vmatpush3.msra.mxu0 %v66_v6  ;;  %v112_v13 = vld [vmem:[%s2440_s2 + $0x1e0] sm:$0xff]  ;;  %v111_v17 = vld [vmem:[%s2440_s2 + $0x1d8] sm:$0xff]  ;;  %v110_v21 = vld [vmem:[%s2440_s2 + $0x1d0] sm:$0xff]  ;;  %v1715_v53 = vsub.s32 %v332_v41, %v334_v42 }
  0x15   :  { %1239 = vmatpush3.msra.mxu1 %v98_v7  ;;  %1205 = vmatprep.subr.mxu0 %v81_v8  ;;  %v64_v14 = vld [vmem:[%s2440_s2 + $0x60] sm:$0xff]  ;;  %v63_v18 = vld [vmem:[%s2440_s2 + $0x58] sm:$0xff]  ;;  %v62_v22 = vld [vmem:[%s2440_s2 + $0x50] sm:$0xff] }
  0x16   :  { %1240 = vmatprep.subr.mxu1 %v113_v9  ;;  %v96_v15 = vld [vmem:[%s2440_s2 + $0x160] sm:$0xff]  ;;  %1206 = vmatpush3.msra.mxu0 %v65_v10  ;;  %v95_v19 = vld [vmem:[%s2440_s2 + $0x158] sm:$0xff]  ;;  %v94_v23 = vld [vmem:[%s2440_s2 + $0x150] sm:$0xff] }
  0x17   :  { %1241 = vmatpush3.msra.mxu1 %v97_v11  ;;  %1207 = vmatprep.subr.mxu0 %v80_v12  ;;  %v77_v24 = vld [vmem:[%s2440_s2 + $0xc8] sm:$0xff]  ;;  %v76_v28 = vld [vmem:[%s2440_s2 + $0xc0] sm:$0xff]  ;;  %v75_v35 = vld [vmem:[%s2440_s2 + $0xb8] sm:$0xff] }
  0x18   :  { %1242 = vmatprep.subr.mxu1 %v112_v13  ;;  %1208 = vmatpush3.msra.mxu0 %v64_v14  ;;  %v109_v25 = vld [vmem:[%s2440_s2 + $0x1c8] sm:$0xff]  ;;  %v108_v29 = vld [vmem:[%s2440_s2 + $0x1c0] sm:$0xff]  ;;  %v107_v36 = vld [vmem:[%s2440_s2 + $0x1b8] sm:$0xff] }
  0x19   :  { %1243 = vmatpush3.msra.mxu1 %v96_v15  ;;  %1209 = vmatprep.subr.mxu0 %v79_v16  ;;  %v61_v26 = vld [vmem:[%s2440_s2 + $0x48] sm:$0xff]  ;;  %v60_v33 = vld [vmem:[%s2440_s2 + $0x40] sm:$0xff]  ;;  %v59_v37 = vld [vmem:[%s2440_s2 + $0x38] sm:$0xff] }
  0x1a   :  { %1244 = vmatprep.subr.mxu1 %v111_v17  ;;  %1210 = vmatpush3.msra.mxu0 %v63_v18  ;;  %v93_v27 = vld [vmem:[%s2440_s2 + $0x148] sm:$0xff]  ;;  %v92_v34 = vld [vmem:[%s2440_s2 + $0x140] sm:$0xff]  ;;  %v91_v38 = vld [vmem:[%s2440_s2 + $0x138] sm:$0xff] }
  0x1b   :  { %1245 = vmatpush3.msra.mxu1 %v95_v19  ;;  %1211 = vmatprep.subr.mxu0 %v78_v20  ;;  %v74_v39 = vld [vmem:[%s2440_s2 + $0xb0] sm:$0xff]  ;;  %v73_v45 = vld [vmem:[%s2440_s2 + $0xa8] sm:$0xff]  ;;  %v72_v49 = vld [vmem:[%s2440_s2 + $0xa0] sm:$0xff] }
  0x1c   :  { %1246 = vmatprep.subr.mxu1 %v110_v21  ;;  %1212 = vmatpush3.msra.mxu0 %v62_v22  ;;  %v106_v40 = vld [vmem:[%s2440_s2 + $0x1b0] sm:$0xff]  ;;  %v105_v46 = vld [vmem:[%s2440_s2 + $0x1a8] sm:$0xff]  ;;  %v104_v50 = vld [vmem:[%s2440_s2 + $0x1a0] sm:$0xff] }
  0x1d   :  { %1247 = vmatpush3.msra.mxu1 %v94_v23  ;;  %1213 = vmatprep.subr.mxu0 %v77_v24  ;;  %v58_v43 = vld [vmem:[%s2440_s2 + $0x30] sm:$0xff]  ;;  %v57_v47 = vld [vmem:[%s2440_s2 + $0x28] sm:$0xff]  ;;  %v56_v51 = vld [vmem:[%s2440_s2 + $0x20] sm:$0xff] }
  0x1e   :  { %1248 = vmatprep.subr.mxu1 %v109_v25  ;;  %1214 = vmatpush3.msra.mxu0 %v61_v26  ;;  %v90_v44 = vld [vmem:[%s2440_s2 + $0x130] sm:$0xff]  ;;  %v89_v48 = vld [vmem:[%s2440_s2 + $0x128] sm:$0xff]  ;;  %v88_v52 = vld [vmem:[%s2440_s2 + $0x120] sm:$0xff] }
  0x1f   :  { %1249 = vmatpush3.msra.mxu1 %v93_v27  ;;  %1215 = vmatprep.subr.mxu0 %v76_v28  ;;  %v36_v54 = vld [vmem:[%s2439_s1] sm:$0xff]  ;;  %v71_v57 = vld [vmem:[%s2440_s2 + $0x98] sm:$0xff]  ;;  %v70_v2 = vld [vmem:[%s2440_s2 + $0x90] sm:$0xff] }
  0x20   :  { %1250 = vmatprep.subr.mxu1 %v108_v29  ;;  %1216 = vmatpush3.msra.mxu0 %v60_v33  ;;  %v40_v55 = vld [vmem:[%s2439_s1 + $0x20] sm:$0xff]  ;;  %v103_v58 = vld [vmem:[%s2440_s2 + $0x198] sm:$0xff]  ;;  %v102_v3 = vld [vmem:[%s2440_s2 + $0x190] sm:$0xff] }
  0x21   :  { %1251 = vmatpush3.msra.mxu1 %v92_v34  ;;  %1217 = vmatprep.subr.mxu0 %v75_v35  ;;  %v44_v56 = vld [vmem:[%s2439_s1 + $0x40] sm:$0xff]  ;;  %v326_v60 = vcombine.low %v36_v54, %v40_v55  ;;  %v327_v61 = vcombine.high %v36_v54, %v40_v55  ;;  %v55_v62 = vld [vmem:[%s2440_s2 + $0x18] sm:$0xff]  ;;  %v54_v5 = vld [vmem:[%s2440_s2 + $0x10] sm:$0xff] }
  0x22   :  { %1252 = vmatprep.subr.mxu1 %v107_v36  ;;  %1218 = vmatpush3.msra.mxu0 %v59_v37  ;;  %v48_v59 = vld [vmem:[%s2439_s1 + $0x60] sm:$0xff]  ;;  %v87_v63 = vld [vmem:[%s2440_s2 + $0x118] sm:$0xff]  ;;  %v86_v6 = vld [vmem:[%s2440_s2 + $0x110] sm:$0xff] }
  0x23   :  { %1253 = vmatpush3.msra.mxu1 %v91_v38  ;;  %1219 = vmatprep.subr.mxu0 %v74_v39  ;;  %v328_v0 = vcombine.low %v44_v56, %v48_v59  ;;  %v329_v1 = vcombine.high %v44_v56, %v48_v59  ;;  %v336_v4 = vrot.slane %v326_v60, %v1715_v53  ;;  %v69_v8 = vld [vmem:[%s2440_s2 + $0x88] sm:$0xff]  ;;  %v68_v14 = vld [vmem:[%s2440_s2 + $0x80] sm:$0xff]  ;;  %v147_v21 = vld [vmem:[%s2440_s2 + $0x2f8] sm:$0xff] }
  0x24   :  { %1254 = vmatprep.subr.mxu1 %v106_v40  ;;  %1220 = vmatpush3.msra.mxu0 %v58_v43  ;;  %v101_v9 = vld [vmem:[%s2440_s2 + $0x188] sm:$0xff]  ;;  %v343_v10 = vrot.slane %v327_v61, %v1715_v53  ;;  %v100_v15 = vld [vmem:[%s2440_s2 + $0x180] sm:$0xff]  ;;  %v179_v23 = vld [vmem:[%s2440_s2 + $0x3f8] sm:$0xff] }
  0x25   :  { %1255 = vmatpush3.msra.mxu1 %v90_v44  ;;  %1221 = vmatprep.subr.mxu0 %v73_v45  ;;  %v350_v7 = vrot.slane %v328_v0, %v1715_v53  ;;  %v357_v11 = vrot.slane %v329_v1, %v1715_v53  ;;  %v53_v12 = vld [vmem:[%s2440_s2 + $0x8] sm:$0xff]  ;;  %v52_v17 = vld [vmem:[%s2440_s2] sm:$0xff]  ;;  %v131_v24 = vld [vmem:[%s2440_s2 + $0x278] sm:$0xff] }
  0x26   :  { %1256 = vmatprep.subr.mxu1 %v105_v46  ;;  %1222 = vmatpush3.msra.mxu0 %v57_v47  ;;  %v85_v13 = vld [vmem:[%s2440_s2 + $0x108] sm:$0xff]  ;;  %v84_v19 = vld [vmem:[%s2440_s2 + $0x100] sm:$0xff]  ;;  %v163_v25 = vld [vmem:[%s2440_s2 + $0x378] sm:$0xff] }
  0x27   :  { %1257 = vmatpush3.msra.mxu1 %v89_v48  ;;  %1223 = vmatprep.subr.mxu0 %v72_v49  ;;  %v359_v16 = vcombine.high %v336_v4, %v350_v7  ;;  %v358_v18 = vcombine.low %v336_v4, %v350_v7  ;;  %v361_v20 = vcombine.high %v343_v10, %v357_v11  ;;  %v146_v26 = vld [vmem:[%s2440_s2 + $0x2f0] sm:$0xff]  ;;  %v145_v30 = vld [vmem:[%s2440_s2 + $0x2e8] sm:$0xff]  ;;  %v144_v34 = vld [vmem:[%s2440_s2 + $0x2e0] sm:$0xff] }
  0x28   :  { %1258 = vmatprep.subr.mxu1 %v104_v50  ;;  %1224 = vmatpush3.msra.mxu0 %v56_v51  ;;  %v360_v22 = vcombine.low %v343_v10, %v357_v11  ;;  %v178_v27 = vld [vmem:[%s2440_s2 + $0x3f0] sm:$0xff]  ;;  %v177_v31 = vld [vmem:[%s2440_s2 + $0x3e8] sm:$0xff]  ;;  %v176_v35 = vld [vmem:[%s2440_s2 + $0x3e0] sm:$0xff] }
  0x29   :  { %1259 = vmatpush3.msra.mxu1 %v88_v52  ;;  %1225 = vmatprep.subr.mxu0 %v71_v57  ;;  %v130_v28 = vld [vmem:[%s2440_s2 + $0x270] sm:$0xff]  ;;  %v129_v32 = vld [vmem:[%s2440_s2 + $0x268] sm:$0xff]  ;;  %v128_v36 = vld [vmem:[%s2440_s2 + $0x260] sm:$0xff] }
  0x2a   :  { %1260 = vmatprep.subr.mxu1 %v103_v58  ;;  %1226 = vmatpush3.msra.mxu0 %v55_v62  ;;  %v162_v29 = vld [vmem:[%s2440_s2 + $0x370] sm:$0xff]  ;;  %v161_v33 = vld [vmem:[%s2440_s2 + $0x368] sm:$0xff]  ;;  %v160_v37 = vld [vmem:[%s2440_s2 + $0x360] sm:$0xff] }
  0x2b   :  { %1261 = vmatpush3.msra.mxu1 %v87_v63  ;;  %1227 = vmatprep.subr.mxu0 %v70_v2  ;;  %v143_v38 = vld [vmem:[%s2440_s2 + $0x2d8] sm:$0xff]  ;;  %v142_v42 = vld [vmem:[%s2440_s2 + $0x2d0] sm:$0xff]  ;;  %v141_v46 = vld [vmem:[%s2440_s2 + $0x2c8] sm:$0xff] }
  0x2c   :  { %1262 = vmatprep.subr.mxu1 %v102_v3  ;;  %1228 = vmatpush3.msra.mxu0 %v54_v5  ;;  %v175_v39 = vld [vmem:[%s2440_s2 + $0x3d8] sm:$0xff]  ;;  %v174_v43 = vld [vmem:[%s2440_s2 + $0x3d0] sm:$0xff]  ;;  %v173_v47 = vld [vmem:[%s2440_s2 + $0x3c8] sm:$0xff] }
  0x2d   :  { %1263 = vmatpush3.msra.mxu1 %v86_v6  ;;  %1229 = vmatprep.subr.mxu0 %v69_v8  ;;  %v127_v40 = vld [vmem:[%s2440_s2 + $0x258] sm:$0xff]  ;;  %v126_v44 = vld [vmem:[%s2440_s2 + $0x250] sm:$0xff]  ;;  %v125_v48 = vld [vmem:[%s2440_s2 + $0x248] sm:$0xff] }
  0x2e   :  { %1264 = vmatprep.subr.mxu1 %v101_v9  ;;  %1230 = vmatpush3.msra.mxu0 %v53_v12  ;;  %v159_v41 = vld [vmem:[%s2440_s2 + $0x358] sm:$0xff]  ;;  %v158_v45 = vld [vmem:[%s2440_s2 + $0x350] sm:$0xff]  ;;  %v157_v49 = vld [vmem:[%s2440_s2 + $0x348] sm:$0xff] }
  0x2f   :  { %1265 = vmatpush3.msra.mxu1 %v85_v13  ;;  %1231 = vmatprep.subr.mxu0 %v68_v14  ;;  %v140_v50 = vld [vmem:[%s2440_s2 + $0x2c0] sm:$0xff]  ;;  %v139_v55 = vld [vmem:[%s2440_s2 + $0x2b8] sm:$0xff]  ;;  %v138_v59 = vld [vmem:[%s2440_s2 + $0x2b0] sm:$0xff] }
  0x30   :  { %1266 = vmatprep.subr.mxu1 %v100_v15  ;;  %1232 = vmatpush3.msra.mxu0 %v52_v17  ;;  %v172_v51 = vld [vmem:[%s2440_s2 + $0x3c0] sm:$0xff]  ;;  %v171_v56 = vld [vmem:[%s2440_s2 + $0x3b8] sm:$0xff]  ;;  %v170_v60 = vld [vmem:[%s2440_s2 + $0x3b0] sm:$0xff] }
  0x31   :  { %550 = vmatprep.mubr.f32.mxu0 %v359_v16  ;;  %1267 = vmatpush3.msra.mxu1 %v84_v19  ;;  %v124_v52 = vld [vmem:[%s2440_s2 + $0x240] sm:$0xff]  ;;  %v123_v57 = vld [vmem:[%s2440_s2 + $0x238] sm:$0xff]  ;;  %v122_v61 = vld [vmem:[%s2440_s2 + $0x230] sm:$0xff] }
  0x32   :  { %551 = vmatmul.mubr.f32.vlgmr.msra.gmra.mxu0 %v358_v18  ;;  %620 = vmatprep.mubr.f32.mxu1 %v361_v20  ;;  %v156_v54 = vld [vmem:[%s2440_s2 + $0x340] sm:$0xff]  ;;  %v155_v58 = vld [vmem:[%s2440_s2 + $0x338] sm:$0xff]  ;;  %v154_v62 = vld [vmem:[%s2440_s2 + $0x330] sm:$0xff] }
  0x33   :  { %1271 = vmatprep.subr.mxu0 %v147_v21  ;;  %1306 = vmatprep.subr.mxu1 %v179_v23  ;;  %v37_v63 = vld [vmem:[%s2439_s1 + $0x8] sm:$0xff]  ;;  %v136_v7 = vld [vmem:[%s2440_s2 + $0x2a0] sm:$0xff]  ;;  %v135_v13 = vld [vmem:[%s2440_s2 + $0x298] sm:$0xff] }
  0x34   :  { %621 = vmatmul.mubr.f32.vlgmr.msra.gmra.mxu1 %v360_v22  ;;  %1272 = vmatpush3.msra.mxu0 %v131_v24  ;;  %v41_v0 = vld [vmem:[%s2439_s1 + $0x28] sm:$0xff]  ;;  %v168_v8 = vld [vmem:[%s2440_s2 + $0x3a0] sm:$0xff]  ;;  %v167_v14 = vld [vmem:[%s2440_s2 + $0x398] sm:$0xff] }
  0x35   :  { %1307 = vmatpush3.msra.mxu1 %v163_v25  ;;  %1273 = vmatprep.subr.mxu0 %v146_v26  ;;  %v45_v1 = vld [vmem:[%s2439_s1 + $0x48] sm:$0xff]  ;;  %v362_v9 = vcombine.low %v37_v63, %v41_v0  ;;  %v120_v11 = vld [vmem:[%s2440_s2 + $0x220] sm:$0xff]  ;;  %v363_v15 = vcombine.high %v37_v63, %v41_v0  ;;  %v119_v17 = vld [vmem:[%s2440_s2 + $0x218] sm:$0xff] }
  0x36   :  { %1308 = vmatprep.subr.mxu1 %v178_v27  ;;  %1274 = vmatpush3.msra.mxu0 %v130_v28  ;;  %v49_v2 = vld [vmem:[%s2439_s1 + $0x68] sm:$0xff]  ;;  %v152_v12 = vld [vmem:[%s2440_s2 + $0x320] sm:$0xff]  ;;  %v151_v18 = vld [vmem:[%s2440_s2 + $0x318] sm:$0xff] }
  0x37   :  { %1309 = vmatpush3.msra.mxu1 %v162_v29  ;;  %1275 = vmatprep.subr.mxu0 %v145_v30  ;;  %v137_v3 = vld [vmem:[%s2440_s2 + $0x2a8] sm:$0xff]  ;;  %v364_v10 = vcombine.low %v45_v1, %v49_v2  ;;  %v365_v16 = vcombine.high %v45_v1, %v49_v2  ;;  %v134_v19 = vld [vmem:[%s2440_s2 + $0x290] sm:$0xff]  ;;  %v372_v21 = vrot.slane %v362_v9, %v1715_v53  ;;  %v235_v9 = vld [vmem:[%s2440_s2 + $0x5b8] sm:$0xff] }
  0x38   :  { %1310 = vmatprep.subr.mxu1 %v177_v31  ;;  %1276 = vmatpush3.msra.mxu0 %v129_v32  ;;  %v169_v4 = vld [vmem:[%s2440_s2 + $0x3a8] sm:$0xff]  ;;  %v166_v20 = vld [vmem:[%s2440_s2 + $0x390] sm:$0xff]  ;;  %v379_v27 = vrot.slane %v363_v15, %v1715_v53  ;;  %v132_v31 = vld [vmem:[%s2440_s2 + $0x280] sm:$0xff] }
  0x39   :  { %1311 = vmatpush3.msra.mxu1 %v161_v33  ;;  %1277 = vmatprep.subr.mxu0 %v144_v34  ;;  %v121_v5 = vld [vmem:[%s2440_s2 + $0x228] sm:$0xff]  ;;  %v386_v22 = vrot.slane %v364_v10, %v1715_v53  ;;  %v118_v23 = vld [vmem:[%s2440_s2 + $0x210] sm:$0xff]  ;;  %v393_v28 = vrot.slane %v365_v16, %v1715_v53  ;;  %v164_v32 = vld [vmem:[%s2440_s2 + $0x380] sm:$0xff] }
  0x3a   :  { %1312 = vmatprep.subr.mxu1 %v176_v35  ;;  %1278 = vmatpush3.msra.mxu0 %v128_v36  ;;  %v153_v6 = vld [vmem:[%s2440_s2 + $0x328] sm:$0xff]  ;;  %v150_v24 = vld [vmem:[%s2440_s2 + $0x310] sm:$0xff]  ;;  %v116_v34 = vld [vmem:[%s2440_s2 + $0x200] sm:$0xff] }
  0x3b   :  { %1313 = vmatpush3.msra.mxu1 %v160_v37  ;;  %1279 = vmatprep.subr.mxu0 %v143_v38  ;;  %v133_v25 = vld [vmem:[%s2440_s2 + $0x288] sm:$0xff]  ;;  %v395_v33 = vcombine.high %v372_v21, %v386_v22  ;;  %v394_v35 = vcombine.low %v372_v21, %v386_v22  ;;  %v148_v36 = vld [vmem:[%s2440_s2 + $0x300] sm:$0xff]  ;;  %v397_v37 = vcombine.high %v379_v27, %v393_v28  ;;  %v211_v38 = vld [vmem:[%s2440_s2 + $0x4f8] sm:$0xff] }
  0x3c   :  { %1314 = vmatprep.subr.mxu1 %v175_v39  ;;  %1280 = vmatpush3.msra.mxu0 %v127_v40  ;;  %v165_v26 = vld [vmem:[%s2440_s2 + $0x388] sm:$0xff]  ;;  %v396_v39 = vcombine.low %v379_v27, %v393_v28  ;;  %v243_v40 = vld [vmem:[%s2440_s2 + $0x5f8] sm:$0xff]  ;;  %v222_v63 = vld [vmem:[%s2440_s2 + $0x550] sm:$0xff] }
  0x3d   :  { %1315 = vmatpush3.msra.mxu1 %v159_v41  ;;  %1281 = vmatprep.subr.mxu0 %v142_v42  ;;  %v117_v29 = vld [vmem:[%s2440_s2 + $0x208] sm:$0xff]  ;;  %v195_v41 = vld [vmem:[%s2440_s2 + $0x478] sm:$0xff]  ;;  %v218_v15 = vld [vmem:[%s2440_s2 + $0x530] sm:$0xff] }
  0x3e   :  { %1316 = vmatprep.subr.mxu1 %v174_v43  ;;  %1282 = vmatpush3.msra.mxu0 %v126_v44  ;;  %v149_v30 = vld [vmem:[%s2440_s2 + $0x308] sm:$0xff]  ;;  %v227_v42 = vld [vmem:[%s2440_s2 + $0x578] sm:$0xff]  ;;  %v210_v43 = vld [vmem:[%s2440_s2 + $0x4f0] sm:$0xff] }
  0x3f   :  { %1317 = vmatpush3.msra.mxu1 %v158_v45  ;;  %1283 = vmatprep.subr.mxu0 %v141_v46  ;;  %v242_v44 = vld [vmem:[%s2440_s2 + $0x5f0] sm:$0xff]  ;;  %v205_v0 = vld [vmem:[%s2440_s2 + $0x4c8] sm:$0xff]  ;;  %v187_v10 = vld [vmem:[%s2440_s2 + $0x438] sm:$0xff] }
  0x40   :  { %1318 = vmatprep.subr.mxu1 %v173_v47  ;;  %1284 = vmatpush3.msra.mxu0 %v125_v48  ;;  %v194_v45 = vld [vmem:[%s2440_s2 + $0x470] sm:$0xff]  ;;  %v209_v47 = vld [vmem:[%s2440_s2 + $0x4e8] sm:$0xff]  ;;  %v184_v28 = vld [vmem:[%s2440_s2 + $0x420] sm:$0xff] }
  0x41   :  { %1319 = vmatpush3.msra.mxu1 %v157_v49  ;;  %1285 = vmatprep.subr.mxu0 %v140_v50  ;;  %v226_v46 = vld [vmem:[%s2440_s2 + $0x570] sm:$0xff]  ;;  %v241_v48 = vld [vmem:[%s2440_s2 + $0x5e8] sm:$0xff] }
  0x42   :  { %1320 = vmatprep.subr.mxu1 %v172_v51  ;;  %1286 = vmatpush3.msra.mxu0 %v124_v52  ;;  %v193_v49 = vld [vmem:[%s2440_s2 + $0x468] sm:$0xff]  ;;  %v208_v51 = vld [vmem:[%s2440_s2 + $0x4e0] sm:$0xff]  ;;  %v38_v16 = vld [vmem:[%s2439_s1 + $0x10] sm:$0xff] }
  0x43   :  { %1321 = vmatpush3.msra.mxu1 %v156_v54  ;;  %1287 = vmatprep.subr.mxu0 %v139_v55  ;;  %v225_v50 = vld [vmem:[%s2440_s2 + $0x568] sm:$0xff]  ;;  %v240_v52 = vld [vmem:[%s2440_s2 + $0x5e0] sm:$0xff] }
  0x44   :  { %1322 = vmatprep.subr.mxu1 %v171_v56  ;;  %1288 = vmatpush3.msra.mxu0 %v123_v57  ;;  %v192_v54 = vld [vmem:[%s2440_s2 + $0x460] sm:$0xff]  ;;  %v207_v56 = vld [vmem:[%s2440_s2 + $0x4d8] sm:$0xff]  ;;  %v237_v1 = vld [vmem:[%s2440_s2 + $0x5c8] sm:$0xff] }
  0x45   :  { %1323 = vmatpush3.msra.mxu1 %v155_v58  ;;  %1289 = vmatprep.subr.mxu0 %v138_v59  ;;  %v224_v55 = vld [vmem:[%s2440_s2 + $0x560] sm:$0xff]  ;;  %v239_v57 = vld [vmem:[%s2440_s2 + $0x5d8] sm:$0xff]  ;;  %v189_v2 = vld [vmem:[%s2440_s2 + $0x448] sm:$0xff] }
  0x46   :  { %1324 = vmatprep.subr.mxu1 %v170_v60  ;;  %1290 = vmatpush3.msra.mxu0 %v122_v61  ;;  %v191_v58 = vld [vmem:[%s2440_s2 + $0x458] sm:$0xff]  ;;  %v206_v60 = vld [vmem:[%s2440_s2 + $0x4d0] sm:$0xff]  ;;  %v233_v21 = vld [vmem:[%s2440_s2 + $0x5a8] sm:$0xff] }
  0x47   :  { %1325 = vmatpush3.msra.mxu1 %v154_v62  ;;  %1291 = vmatprep.subr.mxu0 %v137_v3  ;;  %v223_v59 = vld [vmem:[%s2440_s2 + $0x558] sm:$0xff]  ;;  %v238_v61 = vld [vmem:[%s2440_s2 + $0x5d0] sm:$0xff]  ;;  %v221_v3 = vld [vmem:[%s2440_s2 + $0x548] sm:$0xff] }
  0x48   :  { %1326 = vmatprep.subr.mxu1 %v169_v4  ;;  %1292 = vmatpush3.msra.mxu0 %v121_v5  ;;  %v190_v62 = vld [vmem:[%s2440_s2 + $0x450] sm:$0xff]  ;;  %v204_v4 = vld [vmem:[%s2440_s2 + $0x4c0] sm:$0xff]  ;;  %v185_v22 = vld [vmem:[%s2440_s2 + $0x428] sm:$0xff] }
  0x49   :  { %1327 = vmatpush3.msra.mxu1 %v153_v6  ;;  %1293 = vmatprep.subr.mxu0 %v136_v7  ;;  %v236_v5 = vld [vmem:[%s2440_s2 + $0x5c0] sm:$0xff] }
  0x4a   :  { %1328 = vmatprep.subr.mxu1 %v168_v8  ;;  %1294 = vmatpush3.msra.mxu0 %v120_v11  ;;  %v188_v6 = vld [vmem:[%s2440_s2 + $0x440] sm:$0xff]  ;;  %v203_v8 = vld [vmem:[%s2440_s2 + $0x4b8] sm:$0xff] }
  0x4b   :  { %1329 = vmatpush3.msra.mxu1 %v152_v12  ;;  %1295 = vmatprep.subr.mxu0 %v135_v13  ;;  %v220_v7 = vld [vmem:[%s2440_s2 + $0x540] sm:$0xff]  ;;  %v219_v11 = vld [vmem:[%s2440_s2 + $0x538] sm:$0xff]  ;;  %v202_v12 = vld [vmem:[%s2440_s2 + $0x4b0] sm:$0xff] }
  0x4c   :  { %1330 = vmatprep.subr.mxu1 %v167_v14  ;;  %1296 = vmatpush3.msra.mxu0 %v119_v17  ;;  %v234_v13 = vld [vmem:[%s2440_s2 + $0x5b0] sm:$0xff] }
  0x4d   :  { %1331 = vmatpush3.msra.mxu1 %v151_v18  ;;  %1297 = vmatprep.subr.mxu0 %v134_v19  ;;  %v186_v14 = vld [vmem:[%s2440_s2 + $0x430] sm:$0xff] }
  0x4e   :  { %1332 = vmatprep.subr.mxu1 %v166_v20  ;;  %1298 = vmatpush3.msra.mxu0 %v118_v23  ;;  %v42_v17 = vld [vmem:[%s2439_s1 + $0x30] sm:$0xff]  ;;  %v201_v20 = vld [vmem:[%s2440_s2 + $0x4a8] sm:$0xff] }
  0x4f   :  { %1333 = vmatpush3.msra.mxu1 %v150_v24  ;;  %1299 = vmatprep.subr.mxu0 %v133_v25  ;;  %v46_v18 = vld [vmem:[%s2439_s1 + $0x50] sm:$0xff]  ;;  %v217_v23 = vld [vmem:[%s2440_s2 + $0x528] sm:$0xff]  ;;  %v200_v24 = vld [vmem:[%s2440_s2 + $0x4a0] sm:$0xff] }
  0x50   :  { %1334 = vmatprep.subr.mxu1 %v165_v26  ;;  %1300 = vmatpush3.msra.mxu0 %v117_v29  ;;  %v50_v19 = vld [vmem:[%s2439_s1 + $0x70] sm:$0xff]  ;;  %v232_v25 = vld [vmem:[%s2440_s2 + $0x5a0] sm:$0xff]  ;;  %v398_v26 = vcombine.low %v38_v16, %v42_v17 }
  0x51   :  { %1335 = vmatpush3.msra.mxu1 %v149_v30  ;;  %1301 = vmatprep.subr.mxu0 %v132_v31  ;;  %v400_v27 = vcombine.low %v46_v18, %v50_v19  ;;  %v216_v29 = vld [vmem:[%s2440_s2 + $0x520] sm:$0xff]  ;;  %v199_v30 = vld [vmem:[%s2440_s2 + $0x498] sm:$0xff] }
  0x52   :  { %1336 = vmatprep.subr.mxu1 %v164_v32  ;;  %1302 = vmatpush3.msra.mxu0 %v116_v34  ;;  %v231_v31 = vld [vmem:[%s2440_s2 + $0x598] sm:$0xff]  ;;  %v399_v32 = vcombine.high %v38_v16, %v42_v17  ;;  %v286_v16 = vld [vmem:[%s2440_s2 + $0x750] sm:$0xff]  ;;  %v269_v17 = vld [vmem:[%s2440_s2 + $0x6c8] sm:$0xff] }
  0x53   :  { %690 = vmatprep.mubr.f32.mxu0 %v395_v33  ;;  %1337 = vmatpush3.msra.mxu1 %v148_v36  ;;  %v401_v33 = vcombine.high %v46_v18, %v50_v19  ;;  %v183_v34 = vld [vmem:[%s2440_s2 + $0x418] sm:$0xff]  ;;  %v198_v36 = vld [vmem:[%s2440_s2 + $0x490] sm:$0xff]  ;;  %v301_v18 = vld [vmem:[%s2440_s2 + $0x7c8] sm:$0xff] }
  0x54   :  { %691 = vmatmul.mubr.f32.vlgmr.msra.gmra.mxu0 %v394_v35  ;;  %760 = vmatprep.mubr.f32.mxu1 %v397_v37  ;;  %v215_v35 = vld [vmem:[%s2440_s2 + $0x518] sm:$0xff]  ;;  %v230_v37 = vld [vmem:[%s2440_s2 + $0x590] sm:$0xff]  ;;  %v253_v19 = vld [vmem:[%s2440_s2 + $0x648] sm:$0xff] }
  0x55   :  { %1341 = vmatprep.subr.mxu0 %v211_v38  ;;  %1376 = vmatprep.subr.mxu1 %v243_v40  ;;  %v408_v38 = vrot.slane %v398_v26, %v1715_v53  ;;  %v182_v40 = vld [vmem:[%s2440_s2 + $0x410] sm:$0xff]  ;;  %v299_v26 = vld [vmem:[%s2440_s2 + $0x7b8] sm:$0xff] }
  0x56   :  { %761 = vmatmul.mubr.f32.vlgmr.msra.gmra.mxu1 %v396_v39  ;;  %1342 = vmatpush3.msra.mxu0 %v195_v41  ;;  %v422_v39 = vrot.slane %v400_v27, %v1715_v53  ;;  %v214_v41 = vld [vmem:[%s2440_s2 + $0x510] sm:$0xff]  ;;  %v251_v27 = vld [vmem:[%s2440_s2 + $0x638] sm:$0xff] }
  0x57   :  { %1377 = vmatpush3.msra.mxu1 %v227_v42  ;;  %1343 = vmatprep.subr.mxu0 %v210_v43  ;;  %v197_v42 = vld [vmem:[%s2440_s2 + $0x488] sm:$0xff] }
  0x58   :  { %1378 = vmatprep.subr.mxu1 %v242_v44  ;;  %1344 = vmatpush3.msra.mxu0 %v194_v45  ;;  %v229_v43 = vld [vmem:[%s2440_s2 + $0x588] sm:$0xff]  ;;  %v415_v44 = vrot.slane %v399_v32, %v1715_v53  ;;  %v429_v45 = vrot.slane %v401_v33, %v1715_v53  ;;  %v282_v32 = vld [vmem:[%s2440_s2 + $0x730] sm:$0xff]  ;;  %v39_v33 = vld [vmem:[%s2439_s1 + $0x18] sm:$0xff] }
  0x59   :  { %1379 = vmatpush3.msra.mxu1 %v226_v46  ;;  %1345 = vmatprep.subr.mxu0 %v209_v47  ;;  %v181_v46 = vld [vmem:[%s2440_s2 + $0x408] sm:$0xff] }
  0x5a   :  { %1380 = vmatprep.subr.mxu1 %v241_v48  ;;  %1346 = vmatpush3.msra.mxu0 %v193_v49  ;;  %v213_v47 = vld [vmem:[%s2440_s2 + $0x508] sm:$0xff]  ;;  %v196_v48 = vld [vmem:[%s2440_s2 + $0x480] sm:$0xff] }
  0x5b   :  { %1381 = vmatpush3.msra.mxu1 %v225_v50  ;;  %1347 = vmatprep.subr.mxu0 %v208_v51  ;;  %v228_v49 = vld [vmem:[%s2440_s2 + $0x580] sm:$0xff]  ;;  %v431_v50 = vcombine.high %v408_v38, %v422_v39 }
  0x5c   :  { %1382 = vmatprep.subr.mxu1 %v240_v52  ;;  %1348 = vmatpush3.msra.mxu0 %v192_v54  ;;  %v180_v51 = vld [vmem:[%s2440_s2 + $0x400] sm:$0xff]  ;;  %v430_v52 = vcombine.low %v408_v38, %v422_v39  ;;  %v297_v38 = vld [vmem:[%s2440_s2 + $0x7a8] sm:$0xff] }
  0x5d   :  { %1383 = vmatpush3.msra.mxu1 %v224_v55  ;;  %1349 = vmatprep.subr.mxu0 %v207_v56  ;;  %v212_v54 = vld [vmem:[%s2440_s2 + $0x500] sm:$0xff]  ;;  %v433_v55 = vcombine.high %v415_v44, %v429_v45  ;;  %v275_v56 = vld [vmem:[%s2440_s2 + $0x6f8] sm:$0xff]  ;;  %v249_v39 = vld [vmem:[%s2440_s2 + $0x628] sm:$0xff] }
  0x5e   :  { %1384 = vmatprep.subr.mxu1 %v239_v57  ;;  %1350 = vmatpush3.msra.mxu0 %v191_v58  ;;  %v432_v57 = vcombine.low %v415_v44, %v429_v45  ;;  %v307_v58 = vld [vmem:[%s2440_s2 + $0x7f8] sm:$0xff]  ;;  %v248_v45 = vld [vmem:[%s2440_s2 + $0x620] sm:$0xff] }
  0x5f   :  { %1385 = vmatpush3.msra.mxu1 %v223_v59  ;;  %1351 = vmatprep.subr.mxu0 %v206_v60  ;;  %v259_v59 = vld [vmem:[%s2440_s2 + $0x678] sm:$0xff] }
  0x60   :  { %1386 = vmatprep.subr.mxu1 %v238_v61  ;;  %1352 = vmatpush3.msra.mxu0 %v190_v62  ;;  %v291_v60 = vld [vmem:[%s2440_s2 + $0x778] sm:$0xff]  ;;  %v274_v61 = vld [vmem:[%s2440_s2 + $0x6f0] sm:$0xff] }
  0x61   :  { %1387 = vmatpush3.msra.mxu1 %v222_v63  ;;  %1353 = vmatprep.subr.mxu0 %v205_v0  ;;  %v306_v62 = vld [vmem:[%s2440_s2 + $0x7f0] sm:$0xff] }
  0x62   :  { %1388 = vmatprep.subr.mxu1 %v237_v1  ;;  %1354 = vmatpush3.msra.mxu0 %v189_v2  ;;  %v258_v63 = vld [vmem:[%s2440_s2 + $0x670] sm:$0xff]  ;;  %v273_v1 = vld [vmem:[%s2440_s2 + $0x6e8] sm:$0xff] }
  0x63   :  { %1389 = vmatpush3.msra.mxu1 %v221_v3  ;;  %1355 = vmatprep.subr.mxu0 %v204_v4  ;;  %v290_v0 = vld [vmem:[%s2440_s2 + $0x770] sm:$0xff]  ;;  %v305_v2 = vld [vmem:[%s2440_s2 + $0x7e8] sm:$0xff] }
  0x64   :  { %1390 = vmatprep.subr.mxu1 %v236_v5  ;;  %1356 = vmatpush3.msra.mxu0 %v188_v6  ;;  %v257_v3 = vld [vmem:[%s2440_s2 + $0x668] sm:$0xff]  ;;  %v272_v5 = vld [vmem:[%s2440_s2 + $0x6e0] sm:$0xff] }
  0x65   :  { %1391 = vmatpush3.msra.mxu1 %v220_v7  ;;  %1357 = vmatprep.subr.mxu0 %v203_v8  ;;  %v289_v4 = vld [vmem:[%s2440_s2 + $0x768] sm:$0xff]  ;;  %v304_v6 = vld [vmem:[%s2440_s2 + $0x7e0] sm:$0xff] }
  0x66   :  { %1392 = vmatprep.subr.mxu1 %v235_v9  ;;  %1358 = vmatpush3.msra.mxu0 %v187_v10  ;;  %v256_v7 = vld [vmem:[%s2440_s2 + $0x660] sm:$0xff]  ;;  %v271_v9 = vld [vmem:[%s2440_s2 + $0x6d8] sm:$0xff] }
  0x67   :  { %1393 = vmatpush3.msra.mxu1 %v219_v11  ;;  %1359 = vmatprep.subr.mxu0 %v202_v12  ;;  %v288_v8 = vld [vmem:[%s2440_s2 + $0x760] sm:$0xff]  ;;  %v303_v10 = vld [vmem:[%s2440_s2 + $0x7d8] sm:$0xff] }
  0x68   :  { %1394 = vmatprep.subr.mxu1 %v234_v13  ;;  %1360 = vmatpush3.msra.mxu0 %v186_v14  ;;  %v255_v11 = vld [vmem:[%s2440_s2 + $0x658] sm:$0xff]  ;;  %v270_v13 = vld [vmem:[%s2440_s2 + $0x6d0] sm:$0xff] }
  0x69   :  { %1395 = vmatpush3.msra.mxu1 %v218_v15  ;;  %1361 = vmatprep.subr.mxu0 %v201_v20  ;;  %v287_v12 = vld [vmem:[%s2440_s2 + $0x758] sm:$0xff]  ;;  %v302_v14 = vld [vmem:[%s2440_s2 + $0x7d0] sm:$0xff]  ;;  %v285_v20 = vld [vmem:[%s2440_s2 + $0x748] sm:$0xff] }
  0x6a   :  { %1396 = vmatprep.subr.mxu1 %v233_v21  ;;  %1362 = vmatpush3.msra.mxu0 %v185_v22  ;;  %v254_v15 = vld [vmem:[%s2440_s2 + $0x650] sm:$0xff]  ;;  %v268_v21 = vld [vmem:[%s2440_s2 + $0x6c0] sm:$0xff] }
  0x6b   :  { %1397 = vmatpush3.msra.mxu1 %v217_v23  ;;  %1363 = vmatprep.subr.mxu0 %v200_v24  ;;  %v300_v22 = vld [vmem:[%s2440_s2 + $0x7c0] sm:$0xff] }
  0x6c   :  { %1398 = vmatprep.subr.mxu1 %v232_v25  ;;  %1364 = vmatpush3.msra.mxu0 %v184_v28  ;;  %v252_v23 = vld [vmem:[%s2440_s2 + $0x640] sm:$0xff]  ;;  %v267_v25 = vld [vmem:[%s2440_s2 + $0x6b8] sm:$0xff] }
  0x6d   :  { %1399 = vmatpush3.msra.mxu1 %v216_v29  ;;  %1365 = vmatprep.subr.mxu0 %v199_v30  ;;  %v284_v24 = vld [vmem:[%s2440_s2 + $0x740] sm:$0xff]  ;;  %v283_v28 = vld [vmem:[%s2440_s2 + $0x738] sm:$0xff]  ;;  %v266_v29 = vld [vmem:[%s2440_s2 + $0x6b0] sm:$0xff] }
  0x6e   :  { %1400 = vmatprep.subr.mxu1 %v231_v31  ;;  %1366 = vmatpush3.msra.mxu0 %v183_v34  ;;  %v298_v30 = vld [vmem:[%s2440_s2 + $0x7b0] sm:$0xff]  ;;  %v43_v34 = vld [vmem:[%s2439_s1 + $0x38] sm:$0xff] }
  0x6f   :  { %1401 = vmatpush3.msra.mxu1 %v215_v35  ;;  %1367 = vmatprep.subr.mxu0 %v198_v36  ;;  %v250_v31 = vld [vmem:[%s2440_s2 + $0x630] sm:$0xff]  ;;  %v47_v35 = vld [vmem:[%s2439_s1 + $0x58] sm:$0xff] }
  0x70   :  { %1402 = vmatprep.subr.mxu1 %v230_v37  ;;  %1368 = vmatpush3.msra.mxu0 %v182_v40  ;;  %v51_v36 = vld [vmem:[%s2439_s1 + $0x78] sm:$0xff]  ;;  %v265_v37 = vld [vmem:[%s2440_s2 + $0x6a8] sm:$0xff] }
  0x71   :  { %1403 = vmatpush3.msra.mxu1 %v214_v41  ;;  %1369 = vmatprep.subr.mxu0 %v197_v42  ;;  %v281_v40 = vld [vmem:[%s2440_s2 + $0x728] sm:$0xff]  ;;  %v264_v41 = vld [vmem:[%s2440_s2 + $0x6a0] sm:$0xff]  ;;  %v436_v44 = vcombine.low %v47_v35, %v51_v36 }
  0x72   :  { %1404 = vmatprep.subr.mxu1 %v229_v43  ;;  %1370 = vmatpush3.msra.mxu0 %v181_v46  ;;  %v296_v42 = vld [vmem:[%s2440_s2 + $0x7a0] sm:$0xff]  ;;  %v434_v43 = vcombine.low %v39_v33, %v43_v34 }
  0x73   :  { %1405 = vmatpush3.msra.mxu1 %v213_v47  ;;  %1371 = vmatprep.subr.mxu0 %v196_v48  ;;  %v280_v46 = vld [vmem:[%s2440_s2 + $0x720] sm:$0xff]  ;;  %v435_v47 = vcombine.high %v39_v33, %v43_v34  ;;  %v437_v48 = vcombine.high %v47_v35, %v51_v36 }
  0x74   :  { %1406 = vmatprep.subr.mxu1 %v228_v49  ;;  %1372 = vmatpush3.msra.mxu0 %v180_v51  ;;  %v263_v49 = vld [vmem:[%s2440_s2 + $0x698] sm:$0xff] }
  0x75   :  { %830 = vmatprep.mubr.f32.mxu0 %v431_v50  ;;  %1407 = vmatpush3.msra.mxu1 %v212_v54  ;;  %v295_v50 = vld [vmem:[%s2440_s2 + $0x798] sm:$0xff]  ;;  %v262_v54 = vld [vmem:[%s2440_s2 + $0x690] sm:$0xff] }
  0x76   :  { %831 = vmatmul.mubr.f32.vlgmr.msra.gmra.mxu0 %v430_v52  ;;  %900 = vmatprep.mubr.f32.mxu1 %v433_v55  ;;  %v247_v51 = vld [vmem:[%s2440_s2 + $0x618] sm:$0xff]  ;;  %v294_v55 = vld [vmem:[%s2440_s2 + $0x790] sm:$0xff] }
  0x77   :  { %1411 = vmatprep.subr.mxu0 %v275_v56  ;;  %1446 = vmatprep.subr.mxu1 %v307_v58  ;;  %v279_v52 = vld [vmem:[%s2440_s2 + $0x718] sm:$0xff]  ;;  %v444_v56 = vrot.slane %v434_v43, %v1715_v53  ;;  %v246_v58 = vld [vmem:[%s2440_s2 + $0x610] sm:$0xff] }
  0x78   :  { %901 = vmatmul.mubr.f32.vlgmr.msra.gmra.mxu1 %v432_v57  ;;  %1412 = vmatpush3.msra.mxu0 %v259_v59  ;;  %v458_v57 = vrot.slane %v436_v44, %v1715_v53  ;;  %v278_v59 = vld [vmem:[%s2440_s2 + $0x710] sm:$0xff] }
  0x79   :  { %1447 = vmatpush3.msra.mxu1 %v291_v60  ;;  %1413 = vmatprep.subr.mxu0 %v274_v61  ;;  %v451_v60 = vrot.slane %v435_v47, %v1715_v53  ;;  %v465_v61 = vrot.slane %v437_v48, %v1715_v53  ;;  %v277_v53 = vld [vmem:[%s2440_s2 + $0x708] sm:$0xff] }
  0x7a   :  { %1448 = vmatprep.subr.mxu1 %v306_v62  ;;  %1414 = vmatpush3.msra.mxu0 %v258_v63  ;;  %v261_v62 = vld [vmem:[%s2440_s2 + $0x688] sm:$0xff] }
  0x7b   :  { %1449 = vmatpush3.msra.mxu1 %v290_v0  ;;  %1415 = vmatprep.subr.mxu0 %v273_v1  ;;  %v293_v63 = vld [vmem:[%s2440_s2 + $0x788] sm:$0xff]  ;;  %v260_v1 = vld [vmem:[%s2440_s2 + $0x680] sm:$0xff] }
  0x7c   :  { %1450 = vmatprep.subr.mxu1 %v305_v2  ;;  %1416 = vmatpush3.msra.mxu0 %v257_v3  ;;  %v245_v0 = vld [vmem:[%s2440_s2 + $0x608] sm:$0xff]  ;;  %v292_v2 = vld [vmem:[%s2440_s2 + $0x780] sm:$0xff]  ;;  %v467_v3 = vcombine.high %v444_v56, %v458_v57 }
  0x7d   :  { %1451 = vmatpush3.msra.mxu1 %v289_v4  ;;  %1417 = vmatprep.subr.mxu0 %v272_v5  ;;  %v244_v4 = vld [vmem:[%s2440_s2 + $0x600] sm:$0xff]  ;;  %v469_v5 = vcombine.high %v451_v60, %v465_v61 }
  0x7e   :  { %1452 = vmatprep.subr.mxu1 %v304_v6  ;;  %1418 = vmatpush3.msra.mxu0 %v256_v7  ;;  %v276_v6 = vld [vmem:[%s2440_s2 + $0x700] sm:$0xff]  ;;  %v466_v7 = vcombine.low %v444_v56, %v458_v57 }
  0x7f   :  { %1453 = vmatpush3.msra.mxu1 %v288_v8  ;;  %1419 = vmatprep.subr.mxu0 %v271_v9  ;;  %v468_v8 = vcombine.low %v451_v60, %v465_v61  ;;  %v1054_v9 = vld [vmem:[%s2441_s3 + $0x38] sm:$0xff]  ;;  %v1199_v57 = vld [vmem:[%s2443_s5] ss:$0 sm:$0xff]  ;;  %v1150_v61 = vstv %s1200_s11 }
  0x80   :  { %1454 = vmatprep.subr.mxu1 %v303_v10  ;;  %1420 = vmatpush3.msra.mxu0 %v255_v11  ;;  %v1531_v10 = vmov 0.0   ;;  %v1053_v11 = vld [vmem:[%s2441_s3 + $0x30] sm:$0xff] }
  0x81   :  { %1455 = vmatpush3.msra.mxu1 %v287_v12  ;;  %1421 = vmatprep.subr.mxu0 %v270_v13  ;;  %v1052_v12 = vld [vmem:[%s2441_s3 + $0x28] sm:$0xff]  ;;  %v1051_v13 = vld [vmem:[%s2441_s3 + $0x20] sm:$0xff] }
  0x82   :  { %1456 = vmatprep.subr.mxu1 %v302_v14  ;;  %1422 = vmatpush3.msra.mxu0 %v254_v15  ;;  %v1050_v14 = vld [vmem:[%s2441_s3 + $0x18] sm:$0xff]  ;;  %v1049_v15 = vld [vmem:[%s2441_s3 + $0x10] sm:$0xff] }
  0x83   :  { %1457 = vmatpush3.msra.mxu1 %v286_v16  ;;  %1423 = vmatprep.subr.mxu0 %v269_v17  ;;  %v1048_v16 = vld [vmem:[%s2441_s3 + $0x8] sm:$0xff]  ;;  %v1047_v17 = vld [vmem:[%s2441_s3] sm:$0xff] }
  0x84   :  { %1458 = vmatprep.subr.mxu1 %v301_v18  ;;  %1424 = vmatpush3.msra.mxu0 %v253_v19 }
  0x85   :  { %1459 = vmatpush3.msra.mxu1 %v285_v20  ;;  %1425 = vmatprep.subr.mxu0 %v268_v21 }
  0x86   :  { %1460 = vmatprep.subr.mxu1 %v300_v22  ;;  %1426 = vmatpush3.msra.mxu0 %v252_v23  ;;  %v309_v23 = vstv %s308_s7 }
  0x87   :  { %1461 = vmatpush3.msra.mxu1 %v284_v24  ;;  %1427 = vmatprep.subr.mxu0 %v267_v25 }
  0x88   :  { %1462 = vmatprep.subr.mxu1 %v299_v26  ;;  %1428 = vmatpush3.msra.mxu0 %v251_v27 }
  0x89   :  { %1463 = vmatpush3.msra.mxu1 %v283_v28  ;;  %1429 = vmatprep.subr.mxu0 %v266_v29 }
  0x8a   :  { %1464 = vmatprep.subr.mxu1 %v298_v30  ;;  %1430 = vmatpush3.msra.mxu0 %v250_v31 }
  0x8b   :  { %1465 = vmatpush3.msra.mxu1 %v282_v32  ;;  %1431 = vmatprep.subr.mxu0 %v265_v37 }
  0x8c   :  { %1466 = vmatprep.subr.mxu1 %v297_v38  ;;  %1432 = vmatpush3.msra.mxu0 %v249_v39 }
  0x8d   :  { %1467 = vmatpush3.msra.mxu1 %v281_v40  ;;  %1433 = vmatprep.subr.mxu0 %v264_v41 }
  0x8e   :  { %1468 = vmatprep.subr.mxu1 %v296_v42  ;;  %1434 = vmatpush3.msra.mxu0 %v248_v45 }
  0x8f   :  { %1469 = vmatpush3.msra.mxu1 %v280_v46  ;;  %1435 = vmatprep.subr.mxu0 %v263_v49 }
  0x90   :  { %1470 = vmatprep.subr.mxu1 %v295_v50  ;;  %1436 = vmatpush3.msra.mxu0 %v247_v51 }
  0x91   :  { %1471 = vmatpush3.msra.mxu1 %v279_v52  ;;  %1437 = vmatprep.subr.mxu0 %v262_v54  ;;  %v1197_v52 = vld [vmem:[%s2442_s4] ss:$0 sm:$0xff] }
  0x92   :  { %1472 = vmatprep.subr.mxu1 %v294_v55  ;;  %1438 = vmatpush3.msra.mxu0 %v246_v58 }
  0x93   :  { %1473 = vmatpush3.msra.mxu1 %v278_v59  ;;  %1439 = vmatprep.subr.mxu0 %v261_v62 }
  0x94   :  { %1474 = vmatprep.subr.mxu1 %v293_v63  ;;  %1440 = vmatpush3.msra.mxu0 %v245_v0 }
  0x95   :  { %1475 = vmatpush3.msra.mxu1 %v277_v53  ;;  %1441 = vmatprep.subr.mxu0 %v260_v1 }
  0x96   :  { %1476 = vmatprep.subr.mxu1 %v292_v2  ;;  %1442 = vmatpush3.msra.mxu0 %v244_v4 }
  0x97   :  { %970 = vmatprep.mubr.f32.mxu0 %v467_v3  ;;  %1477 = vmatpush3.msra.mxu1 %v276_v6 }
  0x98   :  { %1040 = vmatprep.mubr.f32.mxu1 %v469_v5  ;;  %971 = vmatmul.mubr.f32.vlgmr.msra.gmra.mxu0 %v466_v7 }
  0x99   :  { %1041 = vmatmul.mubr.f32.vlgmr.msra.gmra.mxu1 %v468_v8  ;;  %1490 = vmatprep.subr.mxu0 %v1531_v10 }
  0x9a   :  { %1491 = vmatpush3.msra.mxu0 %v1054_v9  ;;  %1506 = vmatprep.mubr.msk.f32.mxu0 %vm1532_vm0, %v1531_v10 }
  0x9b   :  { %1492 = vmatprep.subr.mxu0 %v1531_v10 }
  0x9c   :  { %1493 = vmatpush3.msra.mxu0 %v1053_v11 }
  0x9d   :  { %1494 = vmatprep.subr.mxu0 %v1531_v10 }
  0x9e   :  { %1495 = vmatpush3.msra.mxu0 %v1052_v12 }
  0x9f   :  { %1496 = vmatprep.subr.mxu0 %v1531_v10 }
  0xa0   :  { %1497 = vmatpush3.msra.mxu0 %v1051_v13 }
  0xa1   :  { %1498 = vmatprep.subr.mxu0 %v1531_v10 }
  0xa2   :  { %1499 = vmatpush3.msra.mxu0 %v1050_v14 }
  0xa3   :  { %1500 = vmatprep.subr.mxu0 %v1531_v10 }
  0xa4   :  { %1501 = vmatpush3.msra.mxu0 %v1049_v15 }
  0xa5   :  { %1502 = vmatprep.subr.mxu0 %v1531_v10 }
  0xa6   :  { %1503 = vmatpush3.msra.mxu0 %v1048_v16 }
  0xa7   :  { %1504 = vmatprep.subr.mxu0 %v1531_v10 }
  0xa8   :  { %1505 = vmatpush3.msra.mxu0 %v1047_v17 }
  0xf2   :  { %v1233_v18 = vpop.f32.mrf.mxu0 }
  0xf4   :  { %v1268_v19 = vpop.f32.mrf.mxu1  ;;  %v1234_v20 = vpop.f32.mrf.mxu0 }
  0xf5   :  { %v1235_v22 = vadd.f32 %v1234_v20, %v1233_v18 }
  0xf6   :  { %v1269_v24 = vpop.f32.mrf.mxu1 }
  0xf7   :  { %v553_v27 = vadd.f32 %v1235_v22, %v309_v23  ;;  %v1270_v28 = vadd.f32 %v1269_v24, %v1268_v19 }
  0xf9   :  { %v623_v32 = vadd.f32 %v1270_v28, %v553_v27 }
 0x114   :  { %v1303_v21 = vpop.f32.mrf.mxu0 }
 0x116   :  { %v1338_v25 = vpop.f32.mrf.mxu1  ;;  %v1304_v26 = vpop.f32.mrf.mxu0 }
 0x117   :  { %v1305_v30 = vadd.f32 %v1304_v26, %v1303_v21 }
 0x118   :  { %v1339_v31 = vpop.f32.mrf.mxu1 }
 0x119   :  { %v693_v35 = vadd.f32 %v1305_v30, %v623_v32  ;;  %v1340_v36 = vadd.f32 %v1339_v31, %v1338_v25 }
 0x11b   :  { %v763_v39 = vadd.f32 %v1340_v36, %v693_v35 }
 0x136   :  { %v1373_v29 = vpop.f32.mrf.mxu0 }
 0x138   :  { %v1408_v33 = vpop.f32.mrf.mxu1  ;;  %v1374_v34 = vpop.f32.mrf.mxu0 }
 0x139   :  { %v1375_v37 = vadd.f32 %v1374_v34, %v1373_v29 }
 0x13a   :  { %v1409_v38 = vpop.f32.mrf.mxu1 }
 0x13b   :  { %v833_v40 = vadd.f32 %v1375_v37, %v763_v39  ;;  %v1410_v41 = vadd.f32 %v1409_v38, %v1408_v33 }
 0x13d   :  { %v903_v46 = vadd.f32 %v1410_v41, %v833_v40 }
 0x158   :  { %v1443_v42 = vpop.f32.mrf.mxu0 }
 0x159   :  { %v1478_v43 = vpop.f32.mrf.mxu1 }
 0x15a   :  { %v1444_v44 = vpop.f32.mrf.mxu0 }
 0x15b   :  { %v1479_v45 = vpop.f32.mrf.mxu1  ;;  %v1445_v47 = vadd.f32 %v1444_v44, %v1443_v42 }
 0x15c   :  { %v1480_v49 = vadd.f32 %v1479_v45, %v1478_v43 }
 0x15d   :  { %v973_v48 = vadd.f32 %v1445_v47, %v903_v46 }
 0x15f   :  { %v1043_v50 = vadd.f32 %v1480_v49, %v973_v48 }
 0x161   :  { %v1046_v51 = vmax.f32 %v1043_v50, 0.0 }
 0x163   :  { %1507 = vmatmul.mubr.msk.f32.vlgmr.msra.gmra.mxu0 %vm1062_vm1, %v1046_v51 }
 0x223   :  { %v1132_v54 = vpop.f32.mrf.mxu0 }
 0x224   :  { %v1133_v55 = vadd.f32 %v1197_v52, %v1132_v54 }
 0x225   :  { %v1508_v56 = vpop.f32.mrf.mxu0 }
 0x226   :  { %v1136_v58 = vmax.f32 %v1133_v55, 0.0 }
 0x228   :  { %v1144_v59 = vmul.f32 %v1199_v57, %v1136_v58 }
 0x22a   :  { %v1146_v60 = vsel %vm1145_vm2, %v1144_v59, 0.0 }
 0x22b   :  { %1147 = vadd.xlane.f32.xlu0 %v1146_v60 }
 0x2b4   :  { %v1148_v62 = vpop.xlane.xlu0 %1147 }
 0x2b5   :  { %v1151_v63 = vadd.f32 %v1150_v61, %v1148_v62 }
 0x2b7   :  { %1513 = vtanh.f32 %v1151_v63 }
 0x2c4   :  { %v1514_v0 = vpop.eup %1513 }
 0x2c5   :  { %1154 = vst.msk [vmem:[#allocation4] sm:$0xff] %vm1153_vm3, %v1514_v0 }
 0x2cc   :  { %v1173_v53 = vld [vmem:[#allocation4] sm:$0x3] }
 0x2cd   :  { %1174 = vst [vmem:[%s2444_s6] sm:$0x3] %v1173_v53 }
 0x2ce   :  { %1192 = vsyncpa [#allocation3], 1 }

</bundles_post_ra>
